<compile_context>
chip_gen: v5e
topology: v5e:2x2
jax: 0.10.0
libtpu: 0.0.40
codegen_flags: <defaults>
</compile_context>

<pallas_src>
import jax
import jax.numpy as jnp
from jax import lax
from jax.experimental import pallas as pl
from jax.experimental.pallas import tpu as pltpu

# small, module-consistent toy shapes
B, N, H, V = 2, 8, 32, 128
PAD_ID = -1          # aSFTTrainer default pad_id
LAMBDA = 0.1         # asft_kwargs default λ


def _fused_asft_logprob_kernel(x_ref, w_ref, b_ref, tok_ref, mskbd_ref, out_ref):
    """One grid step = one sequence variant (B sequences, B*N token rows).

    logits = x @ W + b ; lp_tok = logits[token] - logsumexp(logits)
    out    = masked_mean(lp_tok) per sequence, emitted lane-dense (B, 128).
    """
    bn = x_ref.shape[0]                                                 # B*N rows

    # ---- LM head matmul on the MXU: bf16 inputs, f32 accumulation ----
    logits = jnp.dot(x_ref[...], w_ref[...],
                     preferred_element_type=jnp.float32) + b_ref[...]   # (B*N, V) f32

    # ---- numerically stable log-sum-exp over the vocab (VPU/EUP, f32) ----
    m = jnp.max(logits, axis=-1, keepdims=True)                         # (B*N, 1)
    lse = m + jnp.log(jnp.sum(jnp.exp(logits - m), axis=-1, keepdims=True))

    # ---- gather the observed-token logit via one-hot select; the full
    #      (B*N, V) log-softmax is never materialized ----
    col = lax.broadcasted_iota(jnp.int32, logits.shape, 1)
    picked = jnp.sum(jnp.where(col == tok_ref[...], logits, 0.0),
                     axis=-1, keepdims=True)                            # (B*N, 1)
    # NOTE: pad positions were remapped to token id 0 in the wrapper; they
    # gather token 0's log-prob but the block-diag loss mask zeroes them below.
    lp_tok = picked - lse                                               # (B*N, 1)

    # ---- per-sequence masked mean via block-diagonal mask matmul ----
    # mskbd row s holds loss_mask of sequence s in columns [s*N, (s+1)*N);
    # one MXU dot replaces both the segment reduce and the (B*N,1)->(B,N)
    # cross-lane reshape.  Broadcasting lp_tok to 128 lanes makes the result
    # lane-dense so the store is an unmasked vst.
    lp_b = jnp.broadcast_to(lp_tok, (bn, out_ref.shape[-1]))            # (B*N, 128)
    num = jnp.dot(mskbd_ref[...], lp_b,
                  preferred_element_type=jnp.float32)                   # (B, 128)
    den = jnp.sum(mskbd_ref[...], axis=-1, keepdims=True)               # (B, 1)
    out_ref[...] = num / jnp.maximum(den, 1e-5)                         # (B, 128)


def fused_masked_seq_logprob(emb_table, w, bias, seqs, loss_masks):
    """Pallas-backed masked_mean(log_softmax(model(seq)).gather(seq)).

    seqs       : (NV, B, N) int32  token ids (pad already remapped to 0)
    loss_masks : (NV, B, N) float32
    returns    : (NV, B) per-sequence masked-mean log-probs
    """
    nv, b, n = seqs.shape
    h = emb_table.shape[-1]
    v = w.shape[-1]
    bn = b * n

    # Embedding gather + flatten done in the wrapper (free XLA layout plumbing).
    # TODO(synk): at production H/N move this gather into the kernel via
    # PrefetchScalarGridSpec + pl.Element row gather to avoid the HBM round-trip.
    x = jnp.take(emb_table, seqs.reshape(nv, bn), axis=0)               # (NV, B*N, H)
    x = x.astype(jnp.bfloat16)                                          # bf16 MXU inputs
    w_bf16 = w.astype(jnp.bfloat16)
    tok = seqs.reshape(nv, bn, 1).astype(jnp.int32)                     # per-row token id

    # block-diagonal loss-mask matrix: row s selects tokens of sequence s
    eye = jnp.eye(b, dtype=jnp.float32)                                 # (B, B)
    msk_bd = (loss_masks.astype(jnp.float32)[:, None, :, :]
              * eye[None, :, :, None]).reshape(nv, b, bn)               # (NV, B, B*N)

    out = pl.pallas_call(
        _fused_asft_logprob_kernel,
        out_shape=jax.ShapeDtypeStruct((nv, b, 128), jnp.float32),
        grid=(nv,),
        in_specs=[
            pl.BlockSpec((None, bn, h), lambda i: (i, 0, 0)),   # embeddings (flat)
            pl.BlockSpec((h, v), lambda i: (0, 0)),             # LM-head weight
            pl.BlockSpec((1, v), lambda i: (0, 0)),             # LM-head bias
            pl.BlockSpec((None, bn, 1), lambda i: (i, 0, 0)),   # token ids (flat)
            pl.BlockSpec((None, b, bn), lambda i: (i, 0, 0)),   # block-diag loss mask
        ],
        out_specs=pl.BlockSpec((None, b, 128), lambda i: (i, 0, 0)),
        # variant axis is independent -> "parallel" shards it across the two
        # TensorCores on v7x; harmless sequential loop on v5e/v6e.
        compiler_params=pltpu.CompilerParams(dimension_semantics=("parallel",)),
        # TODO(synk): for realistic vocab sizes the vocab axis must become a
        # trailing "arbitrary" grid dim with an online LSE (flash-softmax);
        # V=128 fits a single block here.
    )(x, w_bf16, bias.reshape(1, v).astype(jnp.float32), tok, msk_bd)

    # lane 0 of the lane-dense result carries the per-sequence value
    return out[:, :, 0]                                                 # (NV, B)


def asft_forward(params, generated_seq, real_seq, prompt_len,
                 pad_id=PAD_ID, lam=LAMBDA):
    """Mirrors aSFT.forward (the per-step compute the trainer calls)."""
    emb, w, b = params
    n = real_seq.shape[-1]
    pos = jnp.arange(n)

    real_prompt_mask = pos[None, :] < prompt_len[:, None]
    generated_prompt_mask = pos[None, :] < prompt_len[:, None]
    real_seq_prompt = jnp.where(real_prompt_mask, real_seq, pad_id)

    # pad_id handling (masked_fill_ with 0 before feeding the model)
    generated_seq_mask = generated_seq != pad_id
    generated_seq = jnp.where(generated_seq_mask, generated_seq, 0)
    real_seq_mask = real_seq != pad_id
    real_seq = jnp.where(real_seq_mask, real_seq, 0)
    real_seq_prompt_mask = real_seq_prompt != pad_id
    real_seq_prompt = jnp.where(real_seq_prompt_mask, real_seq_prompt, 0)

    gen_loss_mask = (generated_seq_mask & (~generated_prompt_mask)).astype(jnp.float32)
    real_loss_mask = (real_seq_mask & (~real_prompt_mask)).astype(jnp.float32)

    # ---- ONE fused pallas_call over both sequence variants ----
    # The reference model is an EMA copy sharing the policy parameters here,
    # so ref_* log-probs equal the policy_* ones and reuse the same rows; no
    # separate kernels are launched (they never feed the returned loss anyway).
    seqs = jnp.stack([generated_seq, real_seq_prompt], axis=0)          # (2, B, N)
    masks = jnp.stack([gen_loss_mask, real_loss_mask], axis=0)          # (2, B, N)
    per_seq = fused_masked_seq_logprob(emb, w, b, seqs, masks)          # (2, B)

    policy_generated_logprob = per_seq[0]   # == ref_generated_logprob (EMA copy)
    policy_real_logprob = per_seq[1]        # == ref_real_logprob      (EMA copy)
    del policy_generated_logprob            # computed by the module, unused in the loss

    losses = -lam * policy_real_logprob                                 # per-batch
    return jnp.mean(losses)                                             # scalar

    # TODO(synk): the training-loop machinery of aSFTTrainer (optimizer, EMA
    # update, dataloaders, checkpointing, sampling of generated_seq) has no
    # Pallas equivalent; only the loss forward is kernelized.


def _pure_jax_reference(params, generated_seq, real_seq, prompt_len,
                        pad_id=PAD_ID, lam=LAMBDA):
    """Pure-JAX reference with the same bf16-MXU / f32-accumulate recipe."""
    emb, w, b = params
    n = real_seq.shape[-1]
    pos = jnp.arange(n)
    real_prompt_mask = pos[None, :] < prompt_len[:, None]
    real_seq_prompt = jnp.where(real_prompt_mask, real_seq, pad_id)
    real_seq_mask = real_seq != pad_id
    rsp_mask = real_seq_prompt != pad_id
    real_seq_prompt = jnp.where(rsp_mask, real_seq_prompt, 0)
    loss_mask = (real_seq_mask & (~real_prompt_mask)).astype(jnp.float32)

    x = jnp.take(emb, real_seq_prompt, axis=0).astype(jnp.bfloat16)
    logits = jnp.dot(x, w.astype(jnp.bfloat16),
                     preferred_element_type=jnp.float32) + b
    logp = jax.nn.log_softmax(logits, axis=-1)
    lp_tok = jnp.take_along_axis(logp, real_seq_prompt[..., None], axis=-1)[..., 0]
    mm = jnp.sum(lp_tok * loss_mask, -1) / jnp.maximum(jnp.sum(loss_mask, -1), 1e-5)
    return jnp.mean(-lam * mm)


if __name__ == "__main__":
    key = jax.random.PRNGKey(0)
    k_emb, k_w, k_real, k_gen = jax.random.split(key, 4)

    # deterministic toy policy-LM parameters (embedding + LM head)
    emb_table = jax.random.normal(k_emb, (V, H), jnp.float32) * 0.02
    w_head = jax.random.normal(k_w, (H, V), jnp.float32) * 0.02
    b_head = jnp.zeros((V,), jnp.float32)
    params = (emb_table, w_head, b_head)

    # token sequences with trailing padding (pad_id = -1)
    real_seq = jax.random.randint(k_real, (B, N), 0, V, jnp.int32)
    real_seq = real_seq.at[0, 6:].set(PAD_ID)          # batch 0: 2 pad tokens
    generated_seq = jax.random.randint(k_gen, (B, N), 0, V, jnp.int32)
    generated_seq = generated_seq.at[1, 7:].set(PAD_ID)
    prompt_len = jnp.array([3, 5], jnp.int32)

    loss = asft_forward(params, generated_seq, real_seq, prompt_len)
    loss = jax.block_until_ready(loss)

    ref = _pure_jax_reference(params, generated_seq, real_seq, prompt_len)
    ref = jax.block_until_ready(ref)
    assert jnp.allclose(loss, ref, atol=1e-4, rtol=1e-4), (loss, ref)

    print("KERNEL_OK")
</pallas_src>

<mosaic_0001>
module attributes {stable_mosaic.version = 11 : i64} {
  func.func @_fused_asft_logprob_kernel(%arg0: i32, %arg1: memref<1x16x32xbf16, #tpu.memory_space<vmem>>, %arg2: memref<32x128xbf16, #tpu.memory_space<vmem>>, %arg3: memref<1x128xf32, #tpu.memory_space<vmem>>, %arg4: memref<1x16x1xi32, #tpu.memory_space<vmem>>, %arg5: memref<1x2x16xf32, #tpu.memory_space<vmem>>, %arg6: memref<1x2x128xf32, #tpu.memory_space<vmem>>) attributes {dimension_semantics = [#tpu.dimension_semantics<parallel>], iteration_bounds = array<i64: 2>, scalar_prefetch = 0 : i64, scratch_operands = 0 : i64, tpu.core_type = #tpu.core_type<tc>, window_params = [{transform_indices = @transform_0, window_bounds = array<i64: 1, 16, 32>}, {pipeline_mode = #tpu.pipeline_mode<synchronous>, transform_indices = @transform_1, window_bounds = array<i64: 32, 128>}, {pipeline_mode = #tpu.pipeline_mode<synchronous>, transform_indices = @transform_2, window_bounds = array<i64: 1, 128>}, {transform_indices = @transform_3, window_bounds = array<i64: 1, 16, 1>}, {transform_indices = @transform_4, window_bounds = array<i64: 1, 2, 16>}, {transform_indices = @transform_5, window_bounds = array<i64: 1, 2, 128>}]} {
    %c0 = arith.constant 0 : index
    %c0_0 = arith.constant 0 : index
    %c0_1 = arith.constant 0 : index
    %0 = vector.load %arg1[%c0, %c0_0, %c0_1] : memref<1x16x32xbf16, #tpu.memory_space<vmem>>, vector<1x16x32xbf16>
    %1 = vector.shape_cast %0 : vector<1x16x32xbf16> to vector<16x32xbf16>
    %c0_2 = arith.constant 0 : index
    %c0_3 = arith.constant 0 : index
    %2 = vector.load %arg2[%c0_2, %c0_3] : memref<32x128xbf16, #tpu.memory_space<vmem>>, vector<32x128xbf16>
    %cst = arith.constant dense<0.000000e+00> : vector<16x128xf32>
    %3 = tpu.matmul %1, %2, %cst {dimension_numbers = #tpu.dot_dimension_numbers<[1], [0], [0], [1], [0, 0, 1, 1], [], []>} : vector<16x32xbf16>, vector<32x128xbf16>, vector<16x128xf32> -> vector<16x128xf32>
    %c0_4 = arith.constant 0 : index
    %c0_5 = arith.constant 0 : index
    %4 = vector.load %arg3[%c0_4, %c0_5] : memref<1x128xf32, #tpu.memory_space<vmem>>, vector<1x128xf32>
    %5 = vector.broadcast %4 : vector<1x128xf32> to vector<16x128xf32>
    %6 = arith.addf %3, %5 : vector<16x128xf32>
    %cst_6 = arith.constant dense<0xFF800000> : vector<16xf32>
    %7 = vector.multi_reduction <maximumf>, %6, %cst_6 [1] : vector<16x128xf32> to vector<16xf32>
    %8 = vector.shape_cast %7 : vector<16xf32> to vector<16x1xf32>
    %9 = vector.broadcast %8 : vector<16x1xf32> to vector<16x128xf32>
    %10 = arith.subf %6, %9 : vector<16x128xf32>
    %11 = math.exp %10 : vector<16x128xf32>
    %cst_7 = arith.constant dense<0.000000e+00> : vector<16xf32>
    %12 = vector.multi_reduction <add>, %11, %cst_7 [1] : vector<16x128xf32> to vector<16xf32>
    %13 = vector.shape_cast %12 : vector<16xf32> to vector<16x1xf32>
    %14 = math.log %13 : vector<16x1xf32>
    %15 = arith.addf %8, %14 : vector<16x1xf32>
    %16 = tpu.iota {dimensions = array<i32: 1>} : vector<16x128xi32>
    %c0_8 = arith.constant 0 : index
    %c0_9 = arith.constant 0 : index
    %c0_10 = arith.constant 0 : index
    %17 = vector.load %arg4[%c0_8, %c0_9, %c0_10] : memref<1x16x1xi32, #tpu.memory_space<vmem>>, vector<1x16x1xi32>
    %18 = vector.shape_cast %17 : vector<1x16x1xi32> to vector<16x1xi32>
    %19 = vector.broadcast %18 : vector<16x1xi32> to vector<16x128xi32>
    %20 = arith.cmpi eq, %16, %19 : vector<16x128xi32>
    %cst_11 = arith.constant 0.000000e+00 : f32
    %21 = vector.broadcast %cst_11 : f32 to vector<16x128xf32>
    %22 = arith.select %20, %6, %21 : vector<16x128xi1>, vector<16x128xf32>
    %cst_12 = arith.constant dense<0.000000e+00> : vector<16xf32>
    %23 = vector.multi_reduction <add>, %22, %cst_12 [1] : vector<16x128xf32> to vector<16xf32>
    %24 = vector.shape_cast %23 : vector<16xf32> to vector<16x1xf32>
    %25 = arith.subf %24, %15 : vector<16x1xf32>
    %26 = vector.shape_cast %25 : vector<16x1xf32> to vector<16x1xf32>
    %27 = vector.broadcast %26 : vector<16x1xf32> to vector<16x128xf32>
    %c0_13 = arith.constant 0 : index
    %c0_14 = arith.constant 0 : index
    %c0_15 = arith.constant 0 : index
    %28 = vector.load %arg5[%c0_13, %c0_14, %c0_15] : memref<1x2x16xf32, #tpu.memory_space<vmem>>, vector<1x2x16xf32>
    %29 = vector.shape_cast %28 : vector<1x2x16xf32> to vector<2x16xf32>
    %cst_16 = arith.constant dense<0.000000e+00> : vector<2x128xf32>
    %30 = tpu.matmul %29, %27, %cst_16 {dimension_numbers = #tpu.dot_dimension_numbers<[1], [0], [0], [1], [0, 0, 1, 1], [], []>} : vector<2x16xf32>, vector<16x128xf32>, vector<2x128xf32> -> vector<2x128xf32>
    %c0_17 = arith.constant 0 : index
    %c0_18 = arith.constant 0 : index
    %c0_19 = arith.constant 0 : index
    %31 = vector.load %arg5[%c0_17, %c0_18, %c0_19] : memref<1x2x16xf32, #tpu.memory_space<vmem>>, vector<1x2x16xf32>
    %32 = vector.shape_cast %31 : vector<1x2x16xf32> to vector<2x16xf32>
    %cst_20 = arith.constant dense<0.000000e+00> : vector<2xf32>
    %33 = vector.multi_reduction <add>, %32, %cst_20 [1] : vector<2x16xf32> to vector<2xf32>
    %34 = vector.shape_cast %33 : vector<2xf32> to vector<2x1xf32>
    %cst_21 = arith.constant 9.99999974E-6 : f32
    %35 = vector.broadcast %cst_21 : f32 to vector<2x1xf32>
    %36 = arith.maximumf %34, %35 : vector<2x1xf32>
    %37 = vector.broadcast %36 : vector<2x1xf32> to vector<2x128xf32>
    %38 = arith.divf %30, %37 : vector<2x128xf32>
    %c0_22 = arith.constant 0 : index
    %c0_23 = arith.constant 0 : index
    %c0_24 = arith.constant 0 : index
    %39 = vector.load %arg6[%c0_22, %c0_23, %c0_24] : memref<1x2x128xf32, #tpu.memory_space<vmem>>, vector<1x2x128xf32>
    %40 = vector.shape_cast %39 : vector<1x2x128xf32> to vector<2x128xf32>
    %41 = vector.shape_cast %38 : vector<2x128xf32> to vector<1x2x128xf32>
    tpu.vector_store %arg6[%c0_22, %c0_23, %c0_24], %41 {strides = array<i32>} : memref<1x2x128xf32, #tpu.memory_space<vmem>>, vector<1x2x128xf32>,
    return
  }
  func.func @transform_0(%arg0: i32) -> (i32, i32, i32) {
    %c0_i32 = arith.constant 0 : i32
    %c0_i32_0 = arith.constant 0 : i32
    %c0_i32_1 = arith.constant 0 : i32
    return %arg0, %c0_i32, %c0_i32_0 : i32, i32, i32
  }
  func.func @transform_1(%arg0: i32) -> (i32, i32) {
    %c0_i32 = arith.constant 0 : i32
    %c0_i32_0 = arith.constant 0 : i32
    %c0_i32_1 = arith.constant 0 : i32
    return %c0_i32, %c0_i32_0 : i32, i32
  }
  func.func @transform_2(%arg0: i32) -> (i32, i32) {
    %c0_i32 = arith.constant 0 : i32
    %c0_i32_0 = arith.constant 0 : i32
    %c0_i32_1 = arith.constant 0 : i32
    return %c0_i32, %c0_i32_0 : i32, i32
  }
  func.func @transform_3(%arg0: i32) -> (i32, i32, i32) {
    %c0_i32 = arith.constant 0 : i32
    %c0_i32_0 = arith.constant 0 : i32
    %c0_i32_1 = arith.constant 0 : i32
    return %arg0, %c0_i32, %c0_i32_0 : i32, i32, i32
  }
  func.func @transform_4(%arg0: i32) -> (i32, i32, i32) {
    %c0_i32 = arith.constant 0 : i32
    %c0_i32_0 = arith.constant 0 : i32
    %c0_i32_1 = arith.constant 0 : i32
    return %arg0, %c0_i32, %c0_i32_0 : i32, i32, i32
  }
  func.func @transform_5(%arg0: i32) -> (i32, i32, i32) {
    %c0_i32 = arith.constant 0 : i32
    %c0_i32_0 = arith.constant 0 : i32
    %c0_i32_1 = arith.constant 0 : i32
    return %arg0, %c0_i32, %c0_i32_0 : i32, i32, i32
  }
}

</mosaic_0001>

<bundles_post_ra>
// kernel: tpu_custom_call.1
= control target key start
LH: loop header
LB: loop body
LE: loop exit
PB: predicated region body
PF: predicated region fallthrough
CT: control target
= control target key end

     0   :  { %10 = vsyncpa [#allocation3], 0  ;;  %s899_s0 = inlined_call_operand.vmem [shape: bf16[2,16,32], index: 0, kind: input, shape index: {}]   ;;  %s900_s1 = inlined_call_operand.vmem [shape: bf16[32,128], index: 1, kind: input, shape index: {}]   ;;  %s901_s2 = inlined_call_operand.vmem [shape: f32[1,128], index: 2, kind: input, shape index: {}]   ;;  %s902_s3 = inlined_call_operand.vmem [shape: s32[2,16,1], index: 3, kind: input, shape index: {}]   ;;  %s903_s4 = inlined_call_operand.hbm [shape: f32[2,2,16], index: 4, kind: input, shape index: {}]   ;;  %s904_s5 = inlined_call_operand.hbm [shape: f32[2,2,128], index: 5, kind: output, shape index: {}]  }
   0x1   :  { %12 = vsyncpa [#allocation3 + $0x1], 0 }
   0x2   :  { %13 = vsyncpa [#allocation4], 0 }
   0x3   :  { %15 = vsyncpa [#allocation4 + $0x1], 0  ;;  %s748_s18 = smov 0   ;;  %s750_s19 = smov 0  }
   0x4   :  { %s752_s20 = smov 0   ;;  %s754_s21 = smov 0  }
   0x5 LB: > { %s769_s22 = sadd.s32 4294967295, %s715_s21   ;;  %s524_s23 = sadd.s32 4294967294, %s715_s21   ;;  %s715_s21 = sphi %s754_s21, %s914_s21   ;;  %s711_s20 = sphi %s752_s20, %s913_s20   ;;  %s707_s19 = sphi %s750_s19, %s912_s19   ;;  %s703_s18 = sphi %s748_s18, %s911_s18  }
   0x6   : > { %s773_s24 = sadd.s32 1, %s715_s21   ;;  %s122_s25 = sadd.s32 1, %s711_s20 }
   0x7   : > { %s119_s26 = ssub.s32 %s715_s21, %s773_s24  ;;  %p129_p0 = scmp.ne.s32.totalorder %s711_s20, %s707_s19 }
   0x8   : > { %p120_p1 = scmp.eq.s32.totalorder %s119_s26, 0  ;;  %p130_p2 = scmp.eq.s32.totalorder %s715_s21, 0 }
   0x9   : > { %p135_p3 = scmp.ne.s32.totalorder %s707_s19, %s703_s18  ;;  %p136_p4 = scmp.eq.s32.totalorder %s769_s22, 0 }
   0xa   : > { %s785_s27 = scalar_select %p120_p1, %s711_s20, %s122_s25  }
   0xb   : > { %p787_p5 = por %p130_p2, %p129_p0  ;;  %p791_p6 = por %p136_p4, %p135_p3 }
   0xc   : > { %p159_p7 = scmp.eq.s32.totalorder %s769_s22, 1  ;;  %p165_p8 = scmp.eq.s32.totalorder %s524_s23, 1 }
   0xd   : > { %p571_p10 = scmp.lt.s32.totalorder %s715_s21, 2  ;;  %s207_s7 = sand.u32 1, %s711_s20  }
   0xe   : > { %p798_p11 = por %p159_p7, %p129_p0  ;;  %p802_p12 = por %p165_p8, %p135_p3 }
   0xf   : > { %s528_s8 = sshll.u32 %s715_s21, 1  ;;  %s527_s9 = sshll.u32 %s207_s7, 1 }
  0x10   : > { %s215_s12 = scalar_lea.hbm %s903_s4, %s528_s8  ;;  %s211_s14 = scalar_lea.vmem [#allocation2], %s527_s9 }
  0x11   : > { %s217_s13 = sshll.u32 %s215_s12, 4  ;;  %s219_s15 = sshll.u32 %s211_s14, 4  ;;  %s218_s13 = int_to_ptr.hbm [resolvable:$true] %s217_s13  ;;  %s220_s15 = int_to_ptr.vmem [resolvable:$true] %s219_s15 }
  0x12   : > { %p813_p13 = pnand %p571_p10, %p787_p5  ;;  %p529_p0 = scmp.ge.s32.totalorder %s715_s21, 1 }
  0x13   : > { %p224_p1 = scmp.lt.s32.totalorder %s715_s21, 3  ;;  %s208_s17 = scalar_lea.sflag [#allocation3], %s207_s7 }
  0x14   : > { %s619_s23 = sshra.s32 %s218_s13, 4  ;;  %p623_p3 = pneg %p813_p13  ;;  %s620_s23 = int_to_ptr.hbm [resolvable:$true] %s619_s23 }
  0x15   : > { %s621_s25 = scalar_lea.hbm %s620_s23, 2  ;;  %s626_s28 = scalar_lea.hbm %s903_s4, 4 }
  0x16   : > { %p622_p2 = scmp.ne.s32.totalorder %s620_s23, %s621_s25  ;;  %p627_p5 = scmp.lt.s32.totalorder %s620_s23, %s903_s4 }
  0x17   : > { %p628_p8 = scmp.lt.s32.totalorder %s626_s28, %s621_s25 }
  0x18   : > { %p624_p4 = pnand %p623_p3, %p622_p2 }
  0x19   : > { %p629_p10 = por %p628_p8, %p627_p5 }
  0x1a   : > { %p625_p7 = pneg %p624_p4 }
  0x1c   : > { %p630_p9 = pnand %p629_p10, %p625_p7 }
  0x1e   : > { %633 = shalt.err (!%p630_p9)
}
  0x1f   : > { %566 = dma.hbm_to_vmem [thread:$0]  (!%p813_p13), %s218_s13, 32, %s220_s15, %s208_s17  }
  0x20   : > { %p225_p2 = pnand %p529_p0, %p224_p1 }
  0x21   : > { %s834_s7 = sand.u32 (!%p225_p2), 1, %s707_s19  }
  0x22   : > { %228 = sbr.rel (%p225_p2) target bundleno = 581 (0x245), region = 40  ;;  %s530_s11 = sshll.u32 (!%p225_p2), %s834_s7, 1 }
  0x23   : > { %s231_s12 = scalar_lea.sflag (!%p225_p2), [#allocation3], %s834_s7  ;;  %s840_s14 = scalar_lea.vmem (!%p225_p2), [#allocation2], %s530_s11 }
  0x27   : > { %694 = dma.done.wait (%p791_p6), %s231_s12, 32  }
  0x28   : > { %696 = vsyncadd (%p791_p6), %s231_s12, 4294967264  ;;  %p272_p9 = scmp.lt.s32.totalorder %s769_s22, 1  ;;  %v717_v0 = vmov 0   ;;  %v558_v1 = vld [vmem:[%s900_s1 + $0x8] sm:$0xff]  ;;  %v557_v3 = vld [vmem:[%s900_s1] sm:$0xff]  ;;  %vm310_vm0 = vcmask 261120   ;;  %v348_v7 = vlaneseq }
  0x29   : > { %606 = vset.pattern.permute.xlu1 %v717_v0  ;;  %607 = vset.pattern.permute.xlu0 %v717_v0  ;;  %v608_v9 = vld [vmem:[%s901_s2] ss:$0 sm:$0xff]  ;;  %vm393_vm3 = vcmask 123904   ;;  %vm369_vm4 = vcmask 130048  }
  0x2a   : > { %s273_s13 = scalar_select %p272_p9, %s769_s22, 1  ;;  %320 = vmatpush.bf16.msra.mxu0 %v558_v1  ;;  %v349_v8 = vand.u32 127, %v348_v7  ;;  %v368_v25 = vld [vmem:[%s840_s14] sm:$0x3] }
  0x2b   : > { %v394_v26 = vsel %vm393_vm3, %v368_v25, 0.0  ;;  %s551_s14 = sshll.u32 %s769_s22, 1  ;;  %s415_s22 = scalar_lea.sflag [#allocation4], %s834_s7 }
  0x2c   : > { %s555_s15 = sshll.u32 %s273_s13, 4  ;;  %s554_s25 = sshll.u32 %s273_s13, 3 }
  0x2d   : > { %s281_s23 = scalar_lea.vmem %s902_s3, %s555_s15  ;;  %s276_s12 = scalar_lea.vmem %s899_s0, %s554_s25 }
  0x2e   : > { %v351_v2 = vld [vmem:[%s281_s23 + $0x8] sm:$0xff]  ;;  %v556_v4 = vld [vmem:[%s276_s12] sm:$0xff]  ;;  %321 = vmatpush.bf16.msra.mxu0 %v557_v3  ;;  %s271_s25 = scalar_lea.vmem [#allocation5], %s530_s11  ;;  %s669_s11 = scalar_lea.hbm %s904_s5, 4 }
  0x2f   : > { %356 = vperm.xlu1 %606, %v351_v2   ;;  %v350_v5 = vld [vmem:[%s281_s23] sm:$0xff]  ;;  %s425_s23 = scalar_lea.hbm %s904_s5, %s551_s14  ;;  %s427_s26 = sshll.u32 %s271_s25, 4  ;;  %s428_s26 = int_to_ptr.vmem [resolvable:$true] %s427_s26 }
  0x30   : > { %s429_s8 = sshll.u32 %s425_s23, 4  ;;  %s430_s8 = int_to_ptr.hbm [resolvable:$true] %s429_s8 }
  0x31   : > { %548 = vmatmul.msk.bf16.vlgmr.msra.gmra.mxu0 %vm310_vm0, %v556_v4  ;;  %s663_s29 = sshra.s32 %s430_s8, 4  ;;  %s664_s29 = int_to_ptr.hbm [resolvable:$true] %s663_s29 }
  0x32   : > { %s665_s28 = scalar_lea.hbm %s664_s29, 2  ;;  %p670_p1 = scmp.lt.s32.totalorder %s664_s29, %s904_s5 }
  0x33   : > { %p666_p6 = scmp.ne.s32.totalorder %s664_s29, %s665_s28  ;;  %p671_p3 = scmp.lt.s32.totalorder %s669_s11, %s665_s28 }
  0x35   : > { %p667_p13 = pnand %p666_p6, %p798_p11  ;;  %p672_p4 = por %p671_p3, %p670_p1 }
  0x37   : > { %353 = vperm.xlu1 %606, %v350_v5   ;;  %p668_p0 = pneg %p667_p13 }
  0x39   : > { %p673_p7 = pnand %p672_p4, %p668_p0 }
  0xa1   : > { %v357_v6 = vpop.permute.xlu1 %356 }
  0xa2   : > { %vm359_vm2 = vcmp.eq.s32.totalorder %v349_v8, %v357_v6 }
  0xa9   : > { %v354_v10 = vpop.permute.xlu1 %353 }
  0xaa   : > { %vm358_vm1 = vcmp.eq.s32.totalorder %v349_v8, %v354_v10 }
  0xae   : > { %v323_v11 = vpop.f32.mrf.mxu0 }
  0xaf   : > { %v324_v12 = vadd.f32 %v608_v9, %v323_v11 }
  0xb1   : > { %v360_v13 = vsel %vm358_vm1, %v324_v12, 0.0 }
  0xb2   : > { %362 = vadd.xlane.f32.xlu1 %v360_v13 }
  0xb6   : > { %v325_v14 = vpop.f32.mrf.mxu0 }
  0xb7   : > { %v326_v15 = vadd.f32 %v608_v9, %v325_v14 }
  0xb9   : > { %330 = vmax.xlane.f32.xlu0 %v326_v15  ;;  %v361_v16 = vsel %vm359_vm2, %v326_v15, 0.0 }
  0xc1   : > { %328 = vmax.xlane.f32.xlu0 %v324_v12 }
  0xc9   : > { %364 = vadd.xlane.f32.xlu0 %v361_v16 }
 0x125   : > { %v363_v37 = vpop.xlane.xlu1 %362 }
 0x12c   : > { %v331_v17 = vpop.xlane.xlu0 %330 }
 0x12d   : > { %v333_v18 = vsub.f32 %v326_v15, %v331_v17 }
 0x12f   : > { %v336_v19 = vmul.f32 1.442695, %v333_v18 }
 0x131   : > { %609 = vpow2.f32 %v336_v19 }
 0x134   : > { %v329_v20 = vpop.xlane.xlu0 %328 }
 0x135   : > { %v332_v21 = vsub.f32 %v324_v12, %v329_v20 }
 0x137   : > { %v610_v22 = vpop.eup %609  ;;  %v334_v23 = vmul.f32 1.442695, %v332_v21 }
 0x138   : > { %340 = vadd.xlane.f32.xlu2 %v610_v22 }
 0x139   : > { %611 = vpow2.f32 %v334_v23 }
 0x13c   : > { %v365_v32 = vpop.xlane.xlu0 %364 }
 0x13f   : > { %v612_v24 = vpop.eup %611 }
 0x140   : > { %338 = vadd.xlane.f32.xlu2 %v612_v24 }
 0x148   : > { %395 = vadd.xlane.f32.xlu2 %v394_v26 }
 0x1ab   : > { %v341_v27 = vpop.xlane.xlu2 %340 }
 0x1ac   : > { %613 = vlog2.f32 %v341_v27 }
 0x1b2   : > { %v614_v28 = vpop.eup %613 }
 0x1b3   : > { %v345_v29 = vmul.f32 0.6931472, %v614_v28  ;;  %v339_v30 = vpop.xlane.xlu2 %338 }
 0x1b4   : > { %615 = vlog2.f32 %v339_v30 }
 0x1b5   : > { %v347_v31 = vadd.f32 %v345_v29, %v331_v17 }
 0x1b7   : > { %v367_v33 = vsub.f32 %v365_v32, %v347_v31 }
 0x1b9   : > { %387 = vmatpush.msra.mxu1 %v367_v33 }
 0x1ba   : > { %v616_v34 = vpop.eup %615 }
 0x1bb   : > { %v343_v35 = vmul.f32 0.6931472, %v616_v34  ;;  %v396_v39 = vpop.xlane.xlu2 %395 }
 0x1bc   : > { %v397_v40 = vmax.f32 %v396_v39, 1e-05 }
 0x1bd   : > { %v346_v36 = vadd.f32 %v343_v35, %v329_v20 }
 0x1be   : > { %617 = vrcp.f32 %v397_v40  ;;  %vm403_vm5 = vweird.f32 %v397_v40  ;;  %v409_v45 = vand.u32 2147483648, %v397_v40  ;;  %v407_v47 = vand.u32 2147483647, %v397_v40 }
 0x1bf   : > { %v366_v38 = vsub.f32 %v363_v37, %v346_v36 }
 0x1c0   : > { %v410_v48 = vor.u32 1.1754944e-38, %v409_v45  ;;  %vm408_vm8 = vcmp.eq.f32.partialorder %v407_v47, 8.507059e+37 }
 0x1c1   : > { %388 = vmatpush.msra.mxu1 %v366_v38 }
 0x1c2   : > { %549 = vmatmul.msk.f32.vlgmr.msra.gmra.mxu1 %vm369_vm4, %v368_v25 }
 0x1c4   : > { %v618_v41 = vpop.eup %617 }
 0x1c5   : > { %v399_v42 = vmul.f32 %v618_v41, %v397_v40  ;;  %vm404_vm6 = vweird.f32 %v618_v41 }
 0x1c6   : > { %vm405_vm7 = vmor %vm403_vm5, %vm404_vm6 }
 0x1c7   : > { %v400_v43 = vsub.f32 1.0, %v399_v42 }
 0x1c9   : > { %v401_v44 = vmul.f32 %v618_v41, %v400_v43 }
 0x1cb   : > { %v402_v46 = vadd.f32 %v618_v41, %v401_v44 }
 0x1cd   : > { %v406_v49 = vsel %vm405_vm7, %v618_v41, %v402_v46 }
 0x1ce   : > { %v411_v51 = vsel %vm408_vm8, %v410_v48, %v406_v49 }
 0x23f   : > { %v390_v50 = vpop.f32.mrf.mxu1 }
 0x240   : > { %v412_v52 = vmul.f32 %v411_v51, %v390_v50 }
 0x242   : > { %413 = vst [vmem:[%s271_s25] sm:$0x3] %v412_v52 }
 0x243   : > { %676 = shalt.err (!%p673_p7)
}
 0x244   : > { %561 = dma.vmem_to_hbm [thread:$0]  (%p798_p11), %s428_s26, 32, %s430_s8, %s415_s22  }
 0x245 PF: > { %s441_s7 = sand.u32 1, %s703_s18   ;;  %p910_p5 = scmp.ge.s32.totalorder %s715_s21, 2 }
 0x246   : > { %s442_s15 = scalar_lea.sflag [#allocation4], %s441_s7 }
 0x247   : > { %p568_p8 = pnand %p910_p5, %p802_p12 }
 0x249   : > { %p569_p10 = pneg %p568_p8 }
 0x24b   : > { %698 = dma.done.wait (%p569_p10), %s442_s15, 32  }
 0x24c   : > { %700 = vsyncadd (%p569_p10), %s442_s15, 4294967264  ;;  %p18_p2 = scmp.ge.s32.totalorder %s773_s24, 4   ;;  %s911_s18 = smov %s707_s19 }
 0x24d   : > { %s912_s19 = smov %s711_s20  ;;  %s913_s20 = smov %s785_s27 }
 0x24e   : > { %s914_s21 = smov %s773_s24  ;;  %20 = sbr.rel (!%p18_p2) target bundleno = 5 (0x5), region = 91 }
 0x253   :  { %448 = vsyncpa [#allocation3], 1 }
 0x254   :  { %450 = vsyncpa [#allocation3 + $0x1], 1 }
 0x255   :  { %451 = vsyncpa [#allocation4], 1 }
 0x256   :  { %453 = vsyncpa [#allocation4 + $0x1], 1 }

</bundles_post_ra>
